<compile_context>
chip_gen: v7x
topology: tpu7x:2x2x1
jax: 0.10.0
libtpu: 0.0.40
codegen_flags: <defaults>
</compile_context>

<pallas_src>
import math

import jax
import jax.numpy as jnp
from jax.experimental import pallas as pl
from jax.experimental.pallas import tpu as pltpu


def multi_head_attention(query, key, value, attn_mask, d_k=None):
    """query: (Bq, Lq, D), key/value: (Bq, Lk, D), attn_mask: (Bm, 1, Lq, Lk).

    Returns (Bm, Bq, Lq, D), matching torch's broadcast semantics of
      softmax(query @ key^T / sqrt(d_k) + attn_mask, dim=-1) @ value.
    """
    Bq, Lq, D = query.shape
    _, Lk, _ = key.shape
    Bm = attn_mask.shape[0]
    assert attn_mask.shape == (Bm, 1, Lq, Lk), attn_mask.shape
    if d_k is None:
        d_k = D
    scale = 1.0 / math.sqrt(d_k)

    # Only wrapper-side prep: drop the size-1 broadcast dim (contiguous, free).
    mask3 = attn_mask.reshape(Bm, Lq, Lk)

    def kernel(q_ref, k_ref, v_ref, m_ref, o_ref):
        # q: (Bq, Lq, D), k/v: (Bq, Lk, D), m: (Bm, Lq, Lk), o: (Bm, Bq, Lq, D)

        # ---- QK^T: one MXU dot_general, batched over the query batch ----
        qk = jax.lax.dot_general(
            q_ref[...], k_ref[...],
            dimension_numbers=(((2,), (2,)), ((0,), (0,))),
            preferred_element_type=jnp.float32) * scale            # (Bq, Lq, Lk)

        # ---- per mask-batch block: add mask, softmax, attn @ V ----
        # Static unroll over Bm (=2). Each block is written directly into its
        # output slice o_ref[a] — no concatenates, no in/post-kernel transpose.
        for a in range(Bm):
            logits = qk + m_ref[a]                                  # (Bq, Lq, Lk)
            mx = jnp.max(logits, axis=-1, keepdims=True)
            ex = jnp.exp(logits - mx)
            denom = jnp.sum(ex, axis=-1, keepdims=True)
            attn = ex / denom                                       # exact softmax
            out_a = jax.lax.dot_general(
                attn, v_ref[...],
                dimension_numbers=(((2,), (1,)), ((0,), (0,))),
                preferred_element_type=jnp.float32)                 # (Bq, Lq, D)
            o_ref[a] = out_a.astype(o_ref.dtype)

    vmem = pltpu.MemorySpace.VMEM
    return pl.pallas_call(
        kernel,
        out_shape=jax.ShapeDtypeStruct((Bm, Bq, Lq, D), jnp.float32),
        in_specs=[
            pl.BlockSpec(memory_space=vmem),
            pl.BlockSpec(memory_space=vmem),
            pl.BlockSpec(memory_space=vmem),
            pl.BlockSpec(memory_space=vmem),
        ],
        out_specs=pl.BlockSpec(memory_space=vmem),
    )(query, key, value, mask3)


def _reference(query, key, value, attn_mask):
    d_k = query.shape[-1]
    qk = jnp.einsum("bqd,bkd->bqk", query, key) / math.sqrt(d_k)
    logits = qk[None] + attn_mask          # (Bm, Bq, Lq, Lk) via broadcast
    attn = jax.nn.softmax(logits, axis=-1)
    return jnp.einsum("abqk,bkd->abqd", attn, value)


if __name__ == "__main__":
    key0 = jax.random.PRNGKey(0)
    k1, k2, k3, k4 = jax.random.split(key0, 4)

    query = jax.random.normal(k1, (2, 4, 9), dtype=jnp.float32)
    key_t = jax.random.normal(k2, (2, 10, 9), dtype=jnp.float32)
    value = jax.random.normal(k3, (2, 10, 9), dtype=jnp.float32)
    attn_mask = jax.random.normal(k4, (2, 1, 4, 10), dtype=jnp.float32)

    out = multi_head_attention(query, key_t, value, attn_mask)
    jax.block_until_ready(out)

    ref = _reference(query, key_t, value, attn_mask)
    assert out.shape == (2, 2, 4, 9), out.shape
    # exact softmax reciprocal -> tight tolerance (only MXU/XLA accumulation
    # order differences remain)
    assert jnp.allclose(out, ref, atol=1e-5, rtol=1e-5), "mismatch vs reference"

    print("KERNEL_OK")
</pallas_src>

<mosaic_0001>
module attributes {stable_mosaic.version = 11 : i64} {
  func.func @kernel(%arg0: memref<2x4x9xf32, #tpu.memory_space<vmem>>, %arg1: memref<2x10x9xf32, #tpu.memory_space<vmem>>, %arg2: memref<2x10x9xf32, #tpu.memory_space<vmem>>, %arg3: memref<2x4x10xf32, #tpu.memory_space<vmem>>, %arg4: memref<2x2x4x9xf32, #tpu.memory_space<vmem>>) attributes {dimension_semantics = [], scalar_prefetch = 0 : i64, scratch_operands = 0 : i64, tpu.core_type = #tpu.core_type<tc>} {
    %c0 = arith.constant 0 : index
    %c0_0 = arith.constant 0 : index
    %c0_1 = arith.constant 0 : index
    %0 = vector.load %arg0[%c0, %c0_0, %c0_1] : memref<2x4x9xf32, #tpu.memory_space<vmem>>, vector<2x4x9xf32>
    %c0_2 = arith.constant 0 : index
    %c0_3 = arith.constant 0 : index
    %c0_4 = arith.constant 0 : index
    %1 = vector.load %arg1[%c0_2, %c0_3, %c0_4] : memref<2x10x9xf32, #tpu.memory_space<vmem>>, vector<2x10x9xf32>
    %cst = arith.constant dense<0.000000e+00> : vector<2x4x10xf32>
    %2 = tpu.matmul %0, %1, %cst {dimension_numbers = #tpu.dot_dimension_numbers<[2], [2], [1], [1], [0, 0, 0, 1, 1, 1], [0], [0]>} : vector<2x4x9xf32>, vector<2x10x9xf32>, vector<2x4x10xf32> -> vector<2x4x10xf32>
    %cst_5 = arith.constant 0.333333343 : f32
    %3 = vector.broadcast %cst_5 : f32 to vector<2x4x10xf32>
    %4 = arith.mulf %2, %3 : vector<2x4x10xf32>
    %c0_6 = arith.constant 0 : index
    %c0_7 = arith.constant 0 : index
    %c0_8 = arith.constant 0 : index
    %5 = vector.load %arg3[%c0_6, %c0_7, %c0_8] : memref<2x4x10xf32, #tpu.memory_space<vmem>>, vector<1x4x10xf32>
    %6 = vector.shape_cast %5 : vector<1x4x10xf32> to vector<4x10xf32>
    %7 = vector.shape_cast %6 : vector<4x10xf32> to vector<1x4x10xf32>
    %8 = vector.broadcast %7 : vector<1x4x10xf32> to vector<2x4x10xf32>
    %9 = arith.addf %4, %8 : vector<2x4x10xf32>
    %cst_9 = arith.constant dense<0xFF800000> : vector<2x4xf32>
    %10 = vector.multi_reduction <maximumf>, %9, %cst_9 [2] : vector<2x4x10xf32> to vector<2x4xf32>
    %11 = vector.shape_cast %10 : vector<2x4xf32> to vector<2x4x1xf32>
    %12 = vector.broadcast %11 : vector<2x4x1xf32> to vector<2x4x10xf32>
    %13 = arith.subf %9, %12 : vector<2x4x10xf32>
    %14 = math.exp %13 : vector<2x4x10xf32>
    %cst_10 = arith.constant dense<0.000000e+00> : vector<2x4xf32>
    %15 = vector.multi_reduction <add>, %14, %cst_10 [2] : vector<2x4x10xf32> to vector<2x4xf32>
    %16 = vector.shape_cast %15 : vector<2x4xf32> to vector<2x4x1xf32>
    %17 = vector.broadcast %16 : vector<2x4x1xf32> to vector<2x4x10xf32>
    %18 = arith.divf %14, %17 : vector<2x4x10xf32>
    %c0_11 = arith.constant 0 : index
    %c0_12 = arith.constant 0 : index
    %c0_13 = arith.constant 0 : index
    %19 = vector.load %arg2[%c0_11, %c0_12, %c0_13] : memref<2x10x9xf32, #tpu.memory_space<vmem>>, vector<2x10x9xf32>
    %cst_14 = arith.constant dense<0.000000e+00> : vector<2x4x9xf32>
    %20 = tpu.matmul %18, %19, %cst_14 {dimension_numbers = #tpu.dot_dimension_numbers<[2], [1], [1], [2], [0, 0, 0, 1, 1, 2], [0], [0]>} : vector<2x4x10xf32>, vector<2x10x9xf32>, vector<2x4x9xf32> -> vector<2x4x9xf32>
    %c0_15 = arith.constant 0 : index
    %c0_16 = arith.constant 0 : index
    %c0_17 = arith.constant 0 : index
    %c0_18 = arith.constant 0 : index
    %21 = vector.load %arg4[%c0_15, %c0_16, %c0_17, %c0_18] : memref<2x2x4x9xf32, #tpu.memory_space<vmem>>, vector<1x2x4x9xf32>
    %22 = vector.shape_cast %21 : vector<1x2x4x9xf32> to vector<2x4x9xf32>
    %23 = vector.shape_cast %20 : vector<2x4x9xf32> to vector<1x2x4x9xf32>
    tpu.vector_store %arg4[%c0_15, %c0_16, %c0_17, %c0_18], %23 {strides = array<i32>} : memref<2x2x4x9xf32, #tpu.memory_space<vmem>>, vector<1x2x4x9xf32>,
    %c1 = arith.constant 1 : index
    %c0_19 = arith.constant 0 : index
    %c0_20 = arith.constant 0 : index
    %24 = vector.load %arg3[%c1, %c0_19, %c0_20] : memref<2x4x10xf32, #tpu.memory_space<vmem>>, vector<1x4x10xf32>
    %25 = vector.shape_cast %24 : vector<1x4x10xf32> to vector<4x10xf32>
    %26 = vector.shape_cast %25 : vector<4x10xf32> to vector<1x4x10xf32>
    %27 = vector.broadcast %26 : vector<1x4x10xf32> to vector<2x4x10xf32>
    %28 = arith.addf %4, %27 : vector<2x4x10xf32>
    %cst_21 = arith.constant dense<0xFF800000> : vector<2x4xf32>
    %29 = vector.multi_reduction <maximumf>, %28, %cst_21 [2] : vector<2x4x10xf32> to vector<2x4xf32>
    %30 = vector.shape_cast %29 : vector<2x4xf32> to vector<2x4x1xf32>
    %31 = vector.broadcast %30 : vector<2x4x1xf32> to vector<2x4x10xf32>
    %32 = arith.subf %28, %31 : vector<2x4x10xf32>
    %33 = math.exp %32 : vector<2x4x10xf32>
    %cst_22 = arith.constant dense<0.000000e+00> : vector<2x4xf32>
    %34 = vector.multi_reduction <add>, %33, %cst_22 [2] : vector<2x4x10xf32> to vector<2x4xf32>
    %35 = vector.shape_cast %34 : vector<2x4xf32> to vector<2x4x1xf32>
    %36 = vector.broadcast %35 : vector<2x4x1xf32> to vector<2x4x10xf32>
    %37 = arith.divf %33, %36 : vector<2x4x10xf32>
    %c0_23 = arith.constant 0 : index
    %c0_24 = arith.constant 0 : index
    %c0_25 = arith.constant 0 : index
    %38 = vector.load %arg2[%c0_23, %c0_24, %c0_25] : memref<2x10x9xf32, #tpu.memory_space<vmem>>, vector<2x10x9xf32>
    %cst_26 = arith.constant dense<0.000000e+00> : vector<2x4x9xf32>
    %39 = tpu.matmul %37, %38, %cst_26 {dimension_numbers = #tpu.dot_dimension_numbers<[2], [1], [1], [2], [0, 0, 0, 1, 1, 2], [0], [0]>} : vector<2x4x10xf32>, vector<2x10x9xf32>, vector<2x4x9xf32> -> vector<2x4x9xf32>
    %c1_27 = arith.constant 1 : index
    %c0_28 = arith.constant 0 : index
    %c0_29 = arith.constant 0 : index
    %c0_30 = arith.constant 0 : index
    %40 = vector.load %arg4[%c1_27, %c0_28, %c0_29, %c0_30] : memref<2x2x4x9xf32, #tpu.memory_space<vmem>>, vector<1x2x4x9xf32>
    %41 = vector.shape_cast %40 : vector<1x2x4x9xf32> to vector<2x4x9xf32>
    %42 = vector.shape_cast %39 : vector<2x4x9xf32> to vector<1x2x4x9xf32>
    tpu.vector_store %arg4[%c1_27, %c0_28, %c0_29, %c0_30], %42 {strides = array<i32>} : memref<2x2x4x9xf32, #tpu.memory_space<vmem>>, vector<1x2x4x9xf32>,
    return
  }
}

</mosaic_0001>

<bundles_post_ra>
// kernel: tpu_custom_call.1
= control target key start
LH: loop header
LB: loop body
LE: loop exit
PB: predicated region body
PF: predicated region fallthrough
CT: control target
= control target key end

     0   :  { %vm24_vm0 = vcmask 72704   ;;  %v719_v3 = vmov 0.0|0.0   ;;  %vm720_vm2 = vmmov 0   ;;  %v721_v7 = vmov 0.0   ;;  %s851_s0 = inlined_call_operand.vmem [shape: f32[2,4,9], index: 0, kind: input, shape index: {}]   ;;  %s852_s1 = inlined_call_operand.vmem [shape: f32[2,10,9], index: 1, kind: input, shape index: {}]   ;;  %s853_s2 = inlined_call_operand.vmem [shape: f32[2,10,9], index: 2, kind: input, shape index: {}]   ;;  %s854_s3 = inlined_call_operand.vmem [shape: f32[2,4,10], index: 3, kind: input, shape index: {}]   ;;  %s855_s4 = inlined_call_operand.hbm [shape: f32[2,2,4,9], index: 4, kind: output, shape index: {}]  }
   0x1   :  { %v20_v0 = vld [vmem:[%s852_s1] sm:$0xff]  ;;  %v21_v1 = vld [vmem:[%s852_s1 + $0x8] sm:$0x3]  ;;  %v22_v2 = vld [vmem:[%s852_s1 + $0x10] sm:$0xff]  ;;  %648 = vmatprep.subr.bf16.mxu0 %v719_v3  ;;  %652 = vmatprep.subr.bf16.mxu1 %v719_v3 }
   0x2   :  { %v649_v4 = vpack.c.bf16 %v21_v1, %v20_v0  ;;  %vm650_vm1 = vmpackc.low %vm24_vm0, %vm24_vm0  ;;  %v23_v5 = vld [vmem:[%s852_s1 + $0x18] sm:$0x3]  ;;  %610 = vmatprep.mubr.msk.f32.mxu0 %vm720_vm2, %v721_v7  ;;  %617 = vmatprep.mubr.msk.f32.mxu1 %vm720_vm2, %v721_v7 }
   0x3   :  { %v653_v6 = vpack.c.bf16 %v23_v5, %v22_v2 }
   0x4   :  { %9 = vsyncpa [#allocation3], 0  ;;  %651 = vmatpush3.bf16.xpose.msk.msra.mxu0 %vm650_vm1, %v649_v4  ;;  %v18_v8 = vld [vmem:[%s851_s0] sm:$0xf]  ;;  %v19_v9 = vld [vmem:[%s851_s0 + $0x4] sm:$0xf] }
   0x5   :  { %655 = vmatpush3.bf16.xpose.msk.msra.mxu1 %vm650_vm1, %v653_v6  ;;  %656 = vmatprep.subr.bf16.mxu0 %v719_v3  ;;  %v583_v11 = vld [vmem:[%s854_s3 + $0x4] sm:$0xf]  ;;  %v185_v12 = vld [vmem:[%s854_s3] sm:$0xf]  ;;  %vm188_vm3 = vcmask 76800   ;;  %vm219_vm4 = vcmask 1041408  }
   0x6   :  { %660 = vmatprep.subr.bf16.mxu1 %v719_v3  ;;  %v211_v46 = vld [vmem:[%s853_s2] sm:$0xff]  ;;  %v212_v47 = vld [vmem:[%s853_s2 + $0x8] sm:$0x3]  ;;  %vm722_vm5 = vmmov 1   ;;  %v213_v50 = vld [vmem:[%s853_s2 + $0x10] sm:$0xff]  ;;  %vm215_vm7 = vcmask 80896  }
   0x7   :  { %v657_v48 = vpack.c.bf16 %v212_v47, %v211_v46  ;;  %vm805_vm6 = vmpackc.low %vm219_vm4, %vm722_vm5  ;;  %v214_v51 = vld [vmem:[%s853_s2 + $0x18] sm:$0x3]  ;;  %v399_v57 = vld [vmem:[%s853_s2 + $0x8] sm:$0x3]  ;;  %vm369_vm8 = vcmask 68608  }
   0x8   :  { %v661_v52 = vpack.c.bf16 %v214_v51, %v213_v50  ;;  %v665_v59 = vpack.c.bf16 %v399_v57, %v211_v46  ;;  %v401_v61 = vld [vmem:[%s853_s2 + $0x18] sm:$0x3]  ;;  %s723_s2 = smov [#allocation2]  }
   0x9   :  { %v669_v63 = vpack.c.bf16 %v401_v61, %v213_v50  ;;  %s562_s14 = sshll.u32 %s723_s2, 4  ;;  %s563_s14 = int_to_ptr.vmem [resolvable:$true] %s562_s14 }
   0xa   :  { %s695_s15 = scalar_lea.vmem %s563_s14, 256  ;;  %p700_p1 = scmp.lt.s32.totalorder %s563_s14, %s563_s14 }
   0xb   :  { %611 = vmatmul.mubr.msk.f32.vlgmr.msra.gmra.mrb[0].mxu0 %vm24_vm0, %v18_v8  ;;  %p696_p0 = scmp.ne.s32.totalorder %s563_s14, %s695_s15  ;;  %p701_p2 = scmp.lt.s32.totalorder %s695_s15, %s695_s15 }
   0xc   :  { %618 = vmatmul.mubr.msk.f32.vlgmr.msra.gmra.mrb[0].mxu1 %vm24_vm0, %v19_v9  ;;  %624 = vmatprep.mubr.msk.f32.mxu0 %vm720_vm2, %v721_v7 }
   0xd   :  { %631 = vmatprep.mubr.msk.f32.mxu1 %vm720_vm2, %v721_v7  ;;  %659 = vmatpush3.bf16.msk.msra.mxu0 %vm805_vm6, %v657_v48  ;;  %p702_p3 = por %p701_p2, %p700_p1 }
   0xe   :  { %664 = vmatprep.subr.bf16.mxu0 %v719_v3  ;;  %663 = vmatpush3.bf16.msk.msra.mxu1 %vm805_vm6, %v661_v52 }
   0xf   :  { %668 = vmatprep.subr.bf16.mxu1 %v719_v3  ;;  %p703_p4 = pnand %p702_p3, %p696_p0 }
  0xde   :  { %v100_v10 = vpop.f32.mrb[0].mxu0 }
  0xdf   :  { %v183_v13 = vmul.f32 0.33333334, %v100_v10  ;;  %v612_v14 = vpop.f32.mrb[1].mxu0  ;;  %v179_v15 = vpop.f32.mrb[0].mxu1 }
  0xe0   :  { %v184_v16 = vmul.f32 0.33333334, %v179_v15  ;;  %v619_v17 = vpop.f32.mrb[1].mxu1 }
  0xe1   :  { %v374_v18 = vadd.f32 %v583_v11, %v183_v13  ;;  %v186_v19 = vadd.f32 %v185_v12, %v183_v13 }
  0xe2   :  { %v375_v20 = vadd.f32 %v583_v11, %v184_v16  ;;  %v187_v21 = vadd.f32 %v185_v12, %v184_v16 }
  0xe3   :  { %v376_v22 = vsel %vm188_vm3, %v374_v18, -inf  ;;  %v189_v23 = vsel %vm188_vm3, %v186_v19, -inf }
  0xe4   :  { %377 = vmax.xlane.f32.xlu1 %v376_v22  ;;  %190 = vmax.xlane.f32.xlu0 %v189_v23  ;;  %v379_v24 = vsel %vm188_vm3, %v375_v20, -inf  ;;  %v192_v25 = vsel %vm188_vm3, %v187_v21, -inf }
  0xe8   :  { %380 = vmax.xlane.f32.xlu1 %v379_v24  ;;  %193 = vmax.xlane.f32.xlu0 %v192_v25 }
 0x171   :  { %v378_v26 = vpop.xlane.xlu1 %377  ;;  %v191_v27 = vpop.xlane.xlu0 %190 }
 0x172   :  { %v382_v28 = vsub.f32 %v374_v18, %v378_v26  ;;  %v195_v29 = vsub.f32 %v186_v19, %v191_v27 }
 0x174   :  { %v197_v30 = vmul.f32 1.442695, %v195_v29  ;;  %v384_v31 = vmul.f32 1.442695, %v382_v28 }
 0x175   :  { %v381_v32 = vpop.xlane.xlu1 %380  ;;  %v194_v33 = vpop.xlane.xlu0 %193 }
 0x176   :  { %v383_v34 = vsub.f32 %v375_v20, %v381_v32  ;;  %v196_v35 = vsub.f32 %v187_v21, %v194_v33  ;;  %679 = vpow2.f32 %v197_v30 }
 0x177   :  { %681 = vpow2.f32 %v384_v31 }
 0x178   :  { %v199_v36 = vmul.f32 1.442695, %v196_v35  ;;  %v386_v37 = vmul.f32 1.442695, %v383_v34 }
 0x17a   :  { %683 = vpow2.f32 %v199_v36 }
 0x17b   :  { %685 = vpow2.f32 %v386_v37 }
 0x180   :  { %v680_v38 = vpop.eup %679 }
 0x181   :  { %v201_v39 = vsel %vm188_vm3, %v680_v38, 0.0  ;;  %v682_v40 = vpop.eup %681 }
 0x182   :  { %202 = vadd.xlane.f32.xlu0 %v201_v39  ;;  %v388_v42 = vsel %vm188_vm3, %v682_v40, 0.0 }
 0x184   :  { %v684_v41 = vpop.eup %683 }
 0x185   :  { %v204_v43 = vsel %vm188_vm3, %v684_v41, 0.0  ;;  %v686_v44 = vpop.eup %685 }
 0x186   :  { %389 = vadd.xlane.f32.xlu0 %v388_v42  ;;  %205 = vadd.xlane.f32.xlu1 %v204_v43  ;;  %v391_v45 = vsel %vm188_vm3, %v686_v44, 0.0 }
 0x18a   :  { %392 = vadd.xlane.f32.xlu1 %v391_v45 }
 0x20f   :  { %v203_v53 = vpop.xlane.xlu0 %202 }
 0x210   :  { %687 = vrcp.f32 %v203_v53 }
 0x213   :  { %v206_v54 = vpop.xlane.xlu1 %205  ;;  %v390_v55 = vpop.xlane.xlu0 %389 }
 0x214   :  { %689 = vrcp.f32 %v206_v54 }
 0x215   :  { %691 = vrcp.f32 %v390_v55 }
 0x217   :  { %v393_v56 = vpop.xlane.xlu1 %392 }
 0x218   :  { %693 = vrcp.f32 %v393_v56 }
 0x21a   :  { %v688_v58 = vpop.eup %687 }
 0x21b   :  { %v208_v60 = vmul.f32 %v688_v58, %v680_v38 }
 0x21d   :  { %625 = vmatmul.mubr.msk.f32.vlgmr.msra.gmra.mrb[2].mxu0 %vm215_vm7, %v208_v60 }
 0x21e   :  { %v690_v62 = vpop.eup %689  ;;  %667 = vmatpush3.bf16.msk.msra.mxu0 %vm805_vm6, %v665_v59  ;;  %638 = vmatprep.mubr.msk.f32.mxu0 %vm720_vm2, %v721_v7 }
 0x21f   :  { %v692_v0 = vpop.eup %691  ;;  %v210_v1 = vmul.f32 %v690_v62, %v684_v41 }
 0x220   :  { %v395_v2 = vmul.f32 %v692_v0, %v682_v40 }
 0x221   :  { %632 = vmatmul.mubr.msk.f32.vlgmr.msra.gmra.mrb[2].mxu1 %vm215_vm7, %v210_v1 }
 0x222   :  { %v694_v3 = vpop.eup %693  ;;  %639 = vmatmul.mubr.msk.f32.vlgmr.msra.gmra.mrb[4].mxu0 %vm215_vm7, %v395_v2  ;;  %671 = vmatpush3.bf16.msk.msra.mxu1 %vm805_vm6, %v669_v63 }
 0x223   :  { %v397_v4 = vmul.f32 %v694_v3, %v686_v44  ;;  %645 = vmatprep.mubr.msk.f32.mxu1 %vm720_vm2, %v721_v7 }
 0x225   :  { %646 = vmatmul.mubr.msk.f32.vlgmr.msra.gmra.mrb[4].mxu1 %vm215_vm7, %v397_v4 }
 0x2f0   :  { %v289_v5 = vpop.f32.mrb[2].mxu0 }
 0x2f1   :  { %370 = vst.msk [vmem:[#allocation2] sm:$0xf] %vm369_vm8, %v289_v5  ;;  %v626_v6 = vpop.f32.mrb[3].mxu0 }
 0x2f4   :  { %v365_v8 = vpop.f32.mrb[2].mxu1 }
 0x2f5   :  { %371 = vst.msk [vmem:[#allocation2 + $0x4] sm:$0xf] %vm369_vm8, %v365_v8  ;;  %v474_v9 = vpop.f32.mrb[4].mxu0  ;;  %v633_v10 = vpop.f32.mrb[3].mxu1 }
 0x2f6   :  { %555 = vst.msk [vmem:[#allocation2 + $0x8] sm:$0xf] %vm369_vm8, %v474_v9  ;;  %v640_v11 = vpop.f32.mrb[5].mxu0 }
 0x2f8   :  { %v550_v12 = vpop.f32.mrb[4].mxu1 }
 0x2f9   :  { %556 = vst.msk [vmem:[#allocation2 + $0xc] sm:$0xf] %vm369_vm8, %v550_v12  ;;  %v647_v13 = vpop.f32.mrb[5].mxu1 }
 0x2fa   :  { %706 = shalt.err (!%p703_p4)
}
 0x2fb   :  { %s707_s18 = scalar_lea.hbm %s855_s4, 256 }
 0x2fc   :  { %p708_p5 = scmp.ne.s32.totalorder %s855_s4, %s707_s18  ;;  %p711_p6 = scmp.lt.u32.totalorder %s707_s18, %s855_s4 }
 0x2fe   :  { %p713_p7 = pnand %p711_p6, %p708_p5 }
 0x300   :  { %716 = shalt.err (!%p713_p7)
}
 0x301   :  { %s724_s23 = smov 64   ;;  %s725_s24 = smov 4  }
 0x302   :  { %568 = dma.vmem_to_hbm [thread:$0]  %s563_s14, 256, %s855_s4, [#allocation3], %s724_s23, %s724_s23, %s725_s24  }
 0x303   :  { %717 = dma.done.wait [#allocation3], 256  }
 0x304   :  { %718 = vsyncadd [#allocation3], 4294967040 }
 0x305   :  { %572 = vsyncpa [#allocation3], 1 }

</bundles_post_ra>
